<compile_context>
chip_gen: v5e
topology: v5e:2x2
jax: 0.10.0
libtpu: 0.0.40
codegen_flags: <defaults>
</compile_context>

<pallas_src>
import math

import jax
import jax.numpy as jnp
from jax.experimental import pallas as pl
from jax.experimental.pallas import tpu as pltpu

STATE_DIM = 3      # Pendulum-v1 observation_space.shape[0]
HIDDEN_DIM = 128
ACTION_DIM = 11


def _round_up(n, m):
    return ((n + m - 1) // m) * m


def qnet_kernel(x_ref, w1_ref, b1_ref, w2_ref, b2_ref, o_ref):
    x = x_ref[...]        # [TB, STATE_DIM]  f32
    w1 = w1_ref[...]      # [STATE_DIM, HIDDEN_DIM]  f32

    # fc1: K=3 contraction as 3 broadcast multiply-adds on the VPU
    # (avoids a ~2%-utilized MXU pass; f32 so it also lowers cleanly on v5e).
    h = b1_ref[...]                                   # [1, HIDDEN_DIM] -> broadcasts
    for k in range(STATE_DIM):                        # static unroll, K = 3
        h = h + x[:, k:k + 1] * w1[k:k + 1, :]
    h = jnp.maximum(h, 0.0)                           # ReLU on the VPU

    # fc2 on the MXU: bf16 operands, f32 accumulate, f32 bias add.
    out = jnp.dot(h.astype(jnp.bfloat16), w2_ref[...],
                  preferred_element_type=jnp.float32)  # [TB, ACTION_DIM] f32
    o_ref[...] = (out + b2_ref[...]).astype(o_ref.dtype)


def prepare_params(w1, b1, w2, b2):
    """One-time kernel-facing param prep (hoisted out of the forward):
    fc2 weight pre-cast to bf16 for the MXU; everything else f32."""
    return (jnp.asarray(w1, jnp.float32),
            jnp.asarray(b1, jnp.float32).reshape(1, HIDDEN_DIM),
            jnp.asarray(w2, jnp.bfloat16),
            jnp.asarray(b2, jnp.float32).reshape(1, ACTION_DIM))


def qnet_forward(x, params):
    """x: [B, STATE_DIM] f32 -> [B, ACTION_DIM] f32."""
    w1, b1, w2_bf16, b2 = params
    B = x.shape[0]

    # Batch tile: multiple of 8 (sublane), up to 1024 rows.  Live set is
    # ~4 MiB (double-buffered x/out tiles + resident weights + intermediates),
    # well inside the scoped-VMEM default on v5e/v6e/v7x.  cdiv grid + Pallas
    # partial-block handling => no batch padding, no output slice.
    TB = min(1024, _round_up(B, 8))
    nb = pl.cdiv(B, TB)

    flops = 2 * B * HIDDEN_DIM * (STATE_DIM + ACTION_DIM)
    bytes_accessed = (B * (STATE_DIM + ACTION_DIM) * 4
                      + w1.size * 4 + b1.size * 4 + w2_bf16.size * 2 + b2.size * 4)

    return pl.pallas_call(
        qnet_kernel,
        out_shape=jax.ShapeDtypeStruct((B, ACTION_DIM), jnp.float32),
        grid=(nb,),
        in_specs=[
            # x tile streams over the batch grid axis.
            pl.BlockSpec((TB, STATE_DIM), lambda i: (i, 0)),
            # Weights/biases: constant block index -> resident in VMEM.
            pl.BlockSpec((STATE_DIM, HIDDEN_DIM), lambda i: (0, 0)),
            pl.BlockSpec((1, HIDDEN_DIM), lambda i: (0, 0)),
            pl.BlockSpec((HIDDEN_DIM, ACTION_DIM), lambda i: (0, 0)),
            pl.BlockSpec((1, ACTION_DIM), lambda i: (0, 0)),
        ],
        # Direct [B, ACTION_DIM] output: rows are contiguous in HBM, so the
        # writeback is ~44 useful B/row with no padded slab + wrapper slice.
        out_specs=pl.BlockSpec((TB, ACTION_DIM), lambda i: (i, 0)),
        compiler_params=pltpu.CompilerParams(
            # Independent batch tiles: shard grid steps across v7x's 2 TCs.
            dimension_semantics=("parallel",),
        ),
        cost_estimate=pl.CostEstimate(
            flops=flops, transcendentals=0, bytes_accessed=bytes_accessed),
    )(x, w1, b1, w2_bf16, b2)


def init_params(key):
    """Deterministic init mirroring torch.nn.Linear defaults:
    U(-1/sqrt(fan_in), +1/sqrt(fan_in)) for both weight and bias.
    Weights stored as [in, out] so the kernel computes x @ W (== x @ W_torch.T)."""
    k1, k2, k3, k4 = jax.random.split(key, 4)

    bound1 = 1.0 / math.sqrt(STATE_DIM)
    w1 = jax.random.uniform(k1, (STATE_DIM, HIDDEN_DIM), jnp.float32,
                            minval=-bound1, maxval=bound1)
    b1 = jax.random.uniform(k2, (1, HIDDEN_DIM), jnp.float32,
                            minval=-bound1, maxval=bound1)

    bound2 = 1.0 / math.sqrt(HIDDEN_DIM)
    w2 = jax.random.uniform(k3, (HIDDEN_DIM, ACTION_DIM), jnp.float32,
                            minval=-bound2, maxval=bound2)
    b2 = jax.random.uniform(k4, (1, ACTION_DIM), jnp.float32,
                            minval=-bound2, maxval=bound2)
    return w1, b1, w2, b2


def qnet_reference(x, w1, b1, w2, b2):
    """Pure-JAX f32 reference of the PyTorch forward."""
    h = jnp.maximum(x @ w1 + b1, 0.0)
    return h @ w2 + b2


if __name__ == "__main__":
    key = jax.random.PRNGKey(0)
    k_params, k_x = jax.random.split(key, 2)

    raw = init_params(k_params)
    params = prepare_params(*raw)

    # Batch sizes exercising: single small tile (act()), a non-multiple-of-8
    # batch with a partial block, and a 2-step ragged grid (replay batch).
    for name, B in (("act-batch", 8), ("replay-batch", 300), ("ragged-grid", 1040)):
        kx = jax.random.fold_in(k_x, B)
        x = jax.random.normal(kx, (B, STATE_DIM), jnp.float32)
        out = jax.block_until_ready(qnet_forward(x, params))
        ref = qnet_reference(x, *raw)
        assert out.shape == (B, ACTION_DIM), f"{name}: bad shape {out.shape}"
        max_err = jnp.max(jnp.abs(out - ref))
        # Tolerance relaxed vs the pure-f32 version because fc2 runs in bf16
        # on the MXU (f32 accumulate); observed error is ~1e-3 for these scales.
        assert jnp.allclose(out, ref, atol=2e-2, rtol=2e-2), \
            f"{name}: mismatch vs reference, max|err|={max_err}"

    print("KERNEL_OK")
</pallas_src>

<mosaic_0001>
module attributes {stable_mosaic.version = 11 : i64} {
  func.func @qnet_kernel(%arg0: i32, %arg1: memref<8x3xf32, #tpu.memory_space<vmem>>, %arg2: memref<3x128xf32, #tpu.memory_space<vmem>>, %arg3: memref<1x128xf32, #tpu.memory_space<vmem>>, %arg4: memref<128x11xbf16, #tpu.memory_space<vmem>>, %arg5: memref<1x11xf32, #tpu.memory_space<vmem>>, %arg6: memref<8x11xf32, #tpu.memory_space<vmem>>) attributes {dimension_semantics = [#tpu.dimension_semantics<parallel>], iteration_bounds = array<i64: 1>, scalar_prefetch = 0 : i64, scratch_operands = 0 : i64, tpu.core_type = #tpu.core_type<tc>, window_params = [{transform_indices = @transform_0, window_bounds = array<i64: 8, 3>}, {pipeline_mode = #tpu.pipeline_mode<synchronous>, transform_indices = @transform_1, window_bounds = array<i64: 3, 128>}, {pipeline_mode = #tpu.pipeline_mode<synchronous>, transform_indices = @transform_2, window_bounds = array<i64: 1, 128>}, {pipeline_mode = #tpu.pipeline_mode<synchronous>, transform_indices = @transform_3, window_bounds = array<i64: 128, 11>}, {pipeline_mode = #tpu.pipeline_mode<synchronous>, transform_indices = @transform_4, window_bounds = array<i64: 1, 11>}, {transform_indices = @transform_5, window_bounds = array<i64: 8, 11>}]} {
    %c0 = arith.constant 0 : index
    %c0_0 = arith.constant 0 : index
    %0 = vector.load %arg1[%c0, %c0_0] : memref<8x3xf32, #tpu.memory_space<vmem>>, vector<8x3xf32>
    %c0_1 = arith.constant 0 : index
    %c0_2 = arith.constant 0 : index
    %1 = vector.load %arg2[%c0_1, %c0_2] : memref<3x128xf32, #tpu.memory_space<vmem>>, vector<3x128xf32>
    %c0_3 = arith.constant 0 : index
    %c0_4 = arith.constant 0 : index
    %2 = vector.load %arg3[%c0_3, %c0_4] : memref<1x128xf32, #tpu.memory_space<vmem>>, vector<1x128xf32>
    %3 = vector.extract_strided_slice %0 {offsets = [0, 0], sizes = [8, 1], strides = [1, 1]} : vector<8x3xf32> to vector<8x1xf32>
    %4 = vector.extract_strided_slice %1 {offsets = [0, 0], sizes = [1, 128], strides = [1, 1]} : vector<3x128xf32> to vector<1x128xf32>
    %5 = vector.broadcast %3 : vector<8x1xf32> to vector<8x128xf32>
    %6 = vector.broadcast %4 : vector<1x128xf32> to vector<8x128xf32>
    %7 = arith.mulf %5, %6 : vector<8x128xf32>
    %8 = vector.broadcast %2 : vector<1x128xf32> to vector<8x128xf32>
    %9 = arith.addf %8, %7 : vector<8x128xf32>
    %10 = vector.extract_strided_slice %0 {offsets = [0, 1], sizes = [8, 1], strides = [1, 1]} : vector<8x3xf32> to vector<8x1xf32>
    %11 = vector.extract_strided_slice %1 {offsets = [1, 0], sizes = [1, 128], strides = [1, 1]} : vector<3x128xf32> to vector<1x128xf32>
    %12 = vector.broadcast %10 : vector<8x1xf32> to vector<8x128xf32>
    %13 = vector.broadcast %11 : vector<1x128xf32> to vector<8x128xf32>
    %14 = arith.mulf %12, %13 : vector<8x128xf32>
    %15 = arith.addf %9, %14 : vector<8x128xf32>
    %16 = vector.extract_strided_slice %0 {offsets = [0, 2], sizes = [8, 1], strides = [1, 1]} : vector<8x3xf32> to vector<8x1xf32>
    %17 = vector.extract_strided_slice %1 {offsets = [2, 0], sizes = [1, 128], strides = [1, 1]} : vector<3x128xf32> to vector<1x128xf32>
    %18 = vector.broadcast %16 : vector<8x1xf32> to vector<8x128xf32>
    %19 = vector.broadcast %17 : vector<1x128xf32> to vector<8x128xf32>
    %20 = arith.mulf %18, %19 : vector<8x128xf32>
    %21 = arith.addf %15, %20 : vector<8x128xf32>
    %cst = arith.constant 0.000000e+00 : f32
    %22 = vector.broadcast %cst : f32 to vector<8x128xf32>
    %23 = arith.maximumf %21, %22 : vector<8x128xf32>
    %24 = arith.truncf %23 : vector<8x128xf32> to vector<8x128xbf16>
    %c0_5 = arith.constant 0 : index
    %c0_6 = arith.constant 0 : index
    %25 = vector.load %arg4[%c0_5, %c0_6] : memref<128x11xbf16, #tpu.memory_space<vmem>>, vector<128x11xbf16>
    %cst_7 = arith.constant dense<0.000000e+00> : vector<8x11xf32>
    %26 = tpu.matmul %24, %25, %cst_7 {dimension_numbers = #tpu.dot_dimension_numbers<[1], [0], [0], [1], [0, 0, 1, 1], [], []>} : vector<8x128xbf16>, vector<128x11xbf16>, vector<8x11xf32> -> vector<8x11xf32>
    %c0_8 = arith.constant 0 : index
    %c0_9 = arith.constant 0 : index
    %27 = vector.load %arg5[%c0_8, %c0_9] : memref<1x11xf32, #tpu.memory_space<vmem>>, vector<1x11xf32>
    %28 = vector.broadcast %27 : vector<1x11xf32> to vector<8x11xf32>
    %29 = arith.addf %26, %28 : vector<8x11xf32>
    %c0_10 = arith.constant 0 : index
    %c0_11 = arith.constant 0 : index
    %30 = vector.load %arg6[%c0_10, %c0_11] : memref<8x11xf32, #tpu.memory_space<vmem>>, vector<8x11xf32>
    tpu.vector_store %arg6[%c0_10, %c0_11], %29 {strides = array<i32>} : memref<8x11xf32, #tpu.memory_space<vmem>>, vector<8x11xf32>,
    return
  }
  func.func @transform_0(%arg0: i32) -> (i32, i32) {
    %c0_i32 = arith.constant 0 : i32
    %c0_i32_0 = arith.constant 0 : i32
    return %arg0, %c0_i32 : i32, i32
  }
  func.func @transform_1(%arg0: i32) -> (i32, i32) {
    %c0_i32 = arith.constant 0 : i32
    %c0_i32_0 = arith.constant 0 : i32
    %c0_i32_1 = arith.constant 0 : i32
    return %c0_i32, %c0_i32_0 : i32, i32
  }
  func.func @transform_2(%arg0: i32) -> (i32, i32) {
    %c0_i32 = arith.constant 0 : i32
    %c0_i32_0 = arith.constant 0 : i32
    %c0_i32_1 = arith.constant 0 : i32
    return %c0_i32, %c0_i32_0 : i32, i32
  }
  func.func @transform_3(%arg0: i32) -> (i32, i32) {
    %c0_i32 = arith.constant 0 : i32
    %c0_i32_0 = arith.constant 0 : i32
    %c0_i32_1 = arith.constant 0 : i32
    return %c0_i32, %c0_i32_0 : i32, i32
  }
  func.func @transform_4(%arg0: i32) -> (i32, i32) {
    %c0_i32 = arith.constant 0 : i32
    %c0_i32_0 = arith.constant 0 : i32
    %c0_i32_1 = arith.constant 0 : i32
    return %c0_i32, %c0_i32_0 : i32, i32
  }
  func.func @transform_5(%arg0: i32) -> (i32, i32) {
    %c0_i32 = arith.constant 0 : i32
    %c0_i32_0 = arith.constant 0 : i32
    return %arg0, %c0_i32 : i32, i32
  }
}

</mosaic_0001>

<bundles_post_ra>
// kernel: tpu_custom_call.1
= control target key start
LH: loop header
LB: loop body
LE: loop exit
PB: predicated region body
PF: predicated region fallthrough
CT: control target
= control target key end

     0   :  { %v226_v2 = vmov 0   ;;  %v227_v3 = vmov 2   ;;  %s299_s0 = inlined_call_operand.vmem [shape: f32[8,3], index: 0, kind: input, shape index: {}]   ;;  %s300_s1 = inlined_call_operand.vmem [shape: f32[3,128], index: 1, kind: input, shape index: {}]   ;;  %s301_s2 = inlined_call_operand.vmem [shape: f32[1,128], index: 2, kind: input, shape index: {}]   ;;  %s302_s3 = inlined_call_operand.vmem [shape: bf16[128,11], index: 3, kind: input, shape index: {}]   ;;  %s303_s4 = inlined_call_operand.vmem [shape: f32[1,11], index: 4, kind: input, shape index: {}]   ;;  %s304_s5 = inlined_call_operand.hbm [shape: f32[8,11], index: 5, kind: output, shape index: {}]  }
   0x1   :  { %v21_v0 = vld [vmem:[%s299_s0] sm:$0xff]  ;;  %v189_v1 = vld [vmem:[%s302_s3 + $0x38] sm:$0xff]  ;;  %194 = vset.pattern.permute.xlu0 %v226_v2  ;;  %196 = vset.pattern.permute.xlu1 %v227_v3  ;;  %v188_v4 = vld [vmem:[%s302_s3 + $0x30] sm:$0xff] }
   0x2   :  { %26 = vperm.xlu0 %194, %v21_v0   ;;  %43 = vperm.xlu1 %196, %v21_v0  }
   0x3   :  { %119 = vmatpush.bf16.msra.mxu0 %v189_v1 }
   0x4   :  { %10 = vsyncpa [#allocation3], 0  ;;  %v187_v5 = vld [vmem:[%s302_s3 + $0x28] sm:$0xff]  ;;  %v228_v6 = vmov 1   ;;  %v186_v7 = vld [vmem:[%s302_s3 + $0x20] sm:$0xff]  ;;  %s229_s14 = smov [#allocation2]  }
   0x5   :  { %v185_v8 = vld [vmem:[%s302_s3 + $0x18] sm:$0xff]  ;;  %v184_v9 = vld [vmem:[%s302_s3 + $0x10] sm:$0xff]  ;;  %v183_v10 = vld [vmem:[%s302_s3 + $0x8] sm:$0xff]  ;;  %s139_s15 = sshll.u32 %s229_s14, 4  ;;  %s141_s17 = sshll.u32 %s304_s5, 4  ;;  %vm132_vm0 = vcmask 89088   ;;  %s140_s15 = int_to_ptr.vmem [resolvable:$true] %s139_s15  ;;  %s142_s17 = int_to_ptr.hbm [resolvable:$true] %s141_s17 }
   0x6   :  { %v182_v11 = vld [vmem:[%s302_s3] sm:$0xff] }
   0x7   :  { %120 = vmatpush.bf16.msra.mxu0 %v188_v4  ;;  %v22_v12 = vld [vmem:[%s300_s1] sm:$0x7] }
   0x8   :  { %v29_v14 = vperm.slane %v22_v12, 0  ;;  %v198_v15 = vld [vmem:[%s301_s2] ss:$0 sm:$0xff]  ;;  %v39_v17 = vperm.slane %v22_v12, 1  ;;  %v46_v18 = vperm.slane %v22_v12, 2 }
   0x9   :  { %v199_v28 = vld [vmem:[%s303_s4] ss:$0 sm:$0xff] }
   0xa   :  { %195 = vset.pattern.permute.xlu0 %v228_v6 }
   0xb   :  { %36 = vperm.xlu0 %195, %v21_v0   ;;  %121 = vmatpush.bf16.msra.mxu0 %v187_v5 }
   0xf   :  { %122 = vmatpush.bf16.msra.mxu0 %v186_v7 }
  0x13   :  { %197 = vset.pattern.permute.xlu0 %v227_v3  ;;  %123 = vmatpush.bf16.msra.mxu0 %v185_v8 }
  0x17   :  { %124 = vmatpush.bf16.msra.mxu0 %v184_v9 }
  0x1b   :  { %125 = vmatpush.bf16.msra.mxu0 %v183_v10 }
  0x1f   :  { %126 = vmatpush.bf16.msra.mxu0 %v182_v11 }
  0x74   :  { %v27_v13 = vpop.permute.xlu0 %26  ;;  %v44_v19 = vpop.permute.xlu1 %43 }
  0x75   :  { %v30_v16 = vmul.f32 %v29_v14, %v27_v13  ;;  %v47_v23 = vmul.f32 %v46_v18, %v44_v19 }
  0x77   :  { %v34_v21 = vadd.f32 %v198_v15, %v30_v16 }
  0x7d   :  { %v37_v20 = vpop.permute.xlu0 %36 }
  0x7e   :  { %v40_v22 = vmul.f32 %v39_v17, %v37_v20 }
  0x80   :  { %v41_v24 = vadd.f32 %v40_v22, %v34_v21 }
  0x82   :  { %v48_v25 = vadd.f32 %v47_v23, %v41_v24 }
  0x84   :  { %v49_v26 = vmax.f32 %v48_v25, 0.0 }
  0x86   :  { %v50_v27 = vpack.c.bf16 %v49_v26, %v49_v26 }
  0x88   :  { %127 = vmatmul.bf16.vlgmr.msra.gmra.mxu0 %v50_v27 }
 0x105   :  { %v128_v29 = vpop.f32.mrf.mxu0 }
 0x106   :  { %v129_v30 = vadd.f32 %v199_v28, %v128_v29 }
 0x108   :  { %133 = vst.msk [vmem:[#allocation2] sm:$0xff] %vm132_vm0, %v129_v30 }
 0x109   :  { %144 = dma.vmem_to_hbm [thread:$0]  %s140_s15, 128, %s142_s17, [#allocation3]  }
 0x10d   :  { %v130_v31 = vpop.f32.mrf.mxu0 }
 0x10e   :  { %224 = dma.done.wait [#allocation3], 128  }
 0x10f   :  { %225 = vsyncadd [#allocation3], 4294967168 }
 0x110   :  { %149 = vsyncpa [#allocation3], 1 }

</bundles_post_ra>
